<compile_context>
chip_gen: v7x
topology: tpu7x:2x2x1
jax: 0.10.0
libtpu: 0.0.40
codegen_flags: <defaults>
</compile_context>

<pallas_src>
import jax
import jax.numpy as jnp
from jax import lax
from jax.experimental import pallas as pl
from jax.experimental.pallas import tpu as pltpu


def _largest_divisor_leq(n, cap):
    for t in range(min(n, cap), 0, -1):
        if n % t == 0:
            return t
    return 1


def att_model_forward(encoded_text, rel_types_encoded,
                      w_proj, b_proj, w_rel, b_rel, rel_num, tag_size):
    """Forward pass of AttModel after the BERT encoders.

    encoded_text:       (B, S, D)   contextual token embeddings
    rel_types_encoded:  (num_rels, Sr, D)  relation-description embeddings
    w_proj/b_proj:      Linear(2D -> 3D)   stored as (2D, 3D)/(1, 3D)  (x @ W + b)
    w_rel/b_rel:        Linear(3D -> rel_num*tag_size)
    Returns train-mode layout (B, tag_size, rel_num, S_head, S_tail).
    """
    B, S, D = encoded_text.shape
    num_rels, Sr, D2 = rel_types_encoded.shape
    assert D == D2 and num_rels >= B          # reference indexes rel_types_encoded[batch_i]
    P = w_proj.shape[1]                       # 3*D
    O = w_rel.shape[1]                        # rel_num * tag_size
    assert O == rel_num * tag_size
    scale = 1.0 / (D ** 0.5)

    TILE_I = _largest_divisor_leq(S, 16)      # heads per grid step
    n_chunks = S // TILE_I

    # Split the projection weight: rows [:D] act on the head token, rows [D:] on the
    # tail token (x_head|x_tail concat @ W == head @ W[:D] + tail @ W[D:]), so no
    # concat/broadcast is ever materialized.  Weights pre-cast to bf16 for the MXU.
    w_head = w_proj[:D].astype(jnp.bfloat16)              # (D, P)
    w_tail = w_proj[D:].astype(jnp.bfloat16)              # (D, P)
    w_rel16 = w_rel.astype(jnp.bfloat16)                  # (P, O)
    b_proj_f = b_proj.astype(jnp.float32).reshape(1, P)
    b_rel_f = b_rel.astype(jnp.float32).reshape(1, O)

    def kernel(x_ref, rel_ref, wh_ref, wt_ref, bp_ref, wr_ref, br_ref,
               o_ref, hp_s, tp_s):
        c = pl.program_id(1)

        # ---- per-batch prologue: attention refinement + hoisted projections ----
        @pl.when(c == 0)
        def _():
            A = rel_ref[0]                                  # (Sr, D)  f32
            A16 = A.astype(jnp.bfloat16)
            Bm0 = x_ref[0]                                  # (S, D)   f32

            def body(_, Bm):
                # scores = A @ Bm.T  (contract D of both; no explicit transpose)
                s = lax.dot_general(
                    A16, Bm.astype(jnp.bfloat16),
                    (((1,), (1,)), ((), ())),
                    preferred_element_type=jnp.float32) * scale      # (Sr, S)
                w = jax.nn.softmax(s, axis=-1)
                # Bc = w.T @ A  (contract Sr of both)
                Bc = lax.dot_general(
                    w.astype(jnp.bfloat16), A16,
                    (((0,), (0,)), ((), ())),
                    preferred_element_type=jnp.float32)              # (S, D)
                return Bm + Bc

            refined = lax.fori_loop(0, num_rels, body, Bm0, unroll=True)
            r16 = refined.astype(jnp.bfloat16)
            # Hoisted projections: computed once per batch, reused for every head.
            hp_s[...] = jnp.dot(r16, wh_ref[...],
                                preferred_element_type=jnp.float32)          # (S, P)
            tp_s[...] = (jnp.dot(r16, wt_ref[...],
                                 preferred_element_type=jnp.float32)
                         + bp_ref[...])                                      # (S, P)

        # ---- per-chunk: TILE_I head rows vs all S tail rows ----
        i0 = pl.multiple_of(c * TILE_I, TILE_I)
        hp = hp_s[pl.ds(i0, TILE_I), :]                                # (TILE_I, P)
        h = jnp.maximum(hp[:, None, :] + tp_s[...][None, :, :], 0.0)   # (TILE_I, S, P)
        hf = h.reshape(TILE_I * S, P).astype(jnp.bfloat16)
        sc = (jnp.dot(hf, wr_ref[...], preferred_element_type=jnp.float32)
              + br_ref[...])                                           # (TILE_I*S, O)
        o_ref[0] = sc.reshape(TILE_I, S, O).astype(o_ref.dtype)

    # Explicit VMEM budget (matters for BERT-dim shapes on v7x's 64 MiB VMEM).
    est = (2 * (S * D + Sr * D) * 4                     # double-buffered activations
           + (2 * D * P + P * O) * 2 + (P + O) * 4      # bf16 weights + f32 biases
           + 2 * TILE_I * S * O * 4                     # double-buffered out block
           + 2 * S * P * 4)                             # projection scratch
    vmem_limit = int(min(56 * 2 ** 20, max(32 * 2 ** 20, 4 * est)))

    out = pl.pallas_call(
        kernel,
        out_shape=jax.ShapeDtypeStruct((B, S, S, O), encoded_text.dtype),
        grid_spec=pltpu.PrefetchScalarGridSpec(
            num_scalar_prefetch=0,
            grid=(B, n_chunks),
            in_specs=[
                pl.BlockSpec((1, S, D), lambda b, c: (b, 0, 0)),     # encoded_text[b]
                pl.BlockSpec((1, Sr, D), lambda b, c: (b, 0, 0)),    # rel_types[b]
                pl.BlockSpec((D, P), lambda b, c: (0, 0)),           # W_proj head half
                pl.BlockSpec((D, P), lambda b, c: (0, 0)),           # W_proj tail half
                pl.BlockSpec((1, P), lambda b, c: (0, 0)),           # b_proj
                pl.BlockSpec((P, O), lambda b, c: (0, 0)),           # W_rel
                pl.BlockSpec((1, O), lambda b, c: (0, 0)),           # b_rel
            ],
            out_specs=pl.BlockSpec((1, TILE_I, S, O), lambda b, c: (b, c, 0, 0)),
            scratch_shapes=[pltpu.VMEM((S, P), jnp.float32),          # head_proj
                            pltpu.VMEM((S, P), jnp.float32)],         # tail_proj
        ),
        compiler_params=pltpu.CompilerParams(
            dimension_semantics=("parallel", "arbitrary"),
            vmem_limit_bytes=vmem_limit),
    )(encoded_text, rel_types_encoded, w_head, w_tail, b_proj_f, w_rel16, b_rel_f)

    # Only small leading axes are permuted here (S_head/S_tail stay innermost).
    out = out.reshape(B, S, S, rel_num, tag_size)
    # == triple_scores.permute(0, 4, 3, 1, 2) in PyTorch (train=True)
    return jnp.transpose(out, (0, 4, 3, 1, 2))          # (B, tag, rel, S_head, S_tail)


if __name__ == "__main__":
    key = jax.random.PRNGKey(0)
    B, S, D = 2, 8, 32              # batch, seq_len, bert_dim
    rel_num, tag_size = 4, 4        # config.rel_num, config.tag_size
    Sr = 8                          # padded length of tokenized relation descriptions

    k1, k2, k3, k4, k5, k6 = jax.random.split(key, 6)

    # TODO(synk): the pretrained BERT encoder + tokenizer have no Pallas equivalent;
    # the contextual embeddings they would produce (encoded_text, rel_types_encoded)
    # are replaced with deterministic synthetic tensors of the same shapes.
    encoded_text = jax.random.normal(k1, (B, S, D), dtype=jnp.float32)
    rel_types_encoded = jax.random.normal(k2, (rel_num, Sr, D), dtype=jnp.float32)

    # projection_matrix: Linear(2D -> 3D), relation_matrix: Linear(3D -> rel_num*tag_size)
    # (rel_embedding is unused in forward, so it is omitted.)
    w_proj = 0.05 * jax.random.normal(k3, (2 * D, 3 * D), dtype=jnp.float32)
    b_proj = 0.05 * jax.random.normal(k4, (1, 3 * D), dtype=jnp.float32)
    w_rel = 0.05 * jax.random.normal(k5, (3 * D, rel_num * tag_size), dtype=jnp.float32)
    b_rel = 0.05 * jax.random.normal(k6, (1, rel_num * tag_size), dtype=jnp.float32)

    # TODO(synk): nn.Dropout / entity-pair dropout treated as identity (eval semantics);
    # training-mode stochastic masking is not reproduced.
    output = att_model_forward(encoded_text, rel_types_encoded,
                               w_proj, b_proj, w_rel, b_rel, rel_num, tag_size)
    output = jax.block_until_ready(output)

    assert output.shape == (B, tag_size, rel_num, S, S), output.shape
    print("KERNEL_OK")
</pallas_src>

<mosaic_0001>
module attributes {stable_mosaic.version = 11 : i64} {
  func.func @kernel(%arg0: i32, %arg1: i32, %arg2: memref<1x8x32xf32, #tpu.memory_space<vmem>>, %arg3: memref<1x8x32xf32, #tpu.memory_space<vmem>>, %arg4: memref<32x96xbf16, #tpu.memory_space<vmem>>, %arg5: memref<32x96xbf16, #tpu.memory_space<vmem>>, %arg6: memref<1x96xf32, #tpu.memory_space<vmem>>, %arg7: memref<96x16xbf16, #tpu.memory_space<vmem>>, %arg8: memref<1x16xf32, #tpu.memory_space<vmem>>, %arg9: memref<1x8x8x16xf32, #tpu.memory_space<vmem>>, %arg10: memref<8x96xf32, #tpu.memory_space<vmem>>, %arg11: memref<8x96xf32, #tpu.memory_space<vmem>>) attributes {dimension_semantics = [#tpu.dimension_semantics<parallel>, #tpu.dimension_semantics<arbitrary>], iteration_bounds = array<i64: 2, 1>, scalar_prefetch = 0 : i64, scratch_operands = 2 : i64, tpu.core_type = #tpu.core_type<tc>, window_params = [{transform_indices = @transform_0, window_bounds = array<i64: 1, 8, 32>}, {transform_indices = @transform_1, window_bounds = array<i64: 1, 8, 32>}, {pipeline_mode = #tpu.pipeline_mode<synchronous>, transform_indices = @transform_2, window_bounds = array<i64: 32, 96>}, {pipeline_mode = #tpu.pipeline_mode<synchronous>, transform_indices = @transform_3, window_bounds = array<i64: 32, 96>}, {pipeline_mode = #tpu.pipeline_mode<synchronous>, transform_indices = @transform_4, window_bounds = array<i64: 1, 96>}, {pipeline_mode = #tpu.pipeline_mode<synchronous>, transform_indices = @transform_5, window_bounds = array<i64: 96, 16>}, {pipeline_mode = #tpu.pipeline_mode<synchronous>, transform_indices = @transform_6, window_bounds = array<i64: 1, 16>}, {transform_indices = @transform_7, window_bounds = array<i64: 1, 8, 8, 16>}]} {
    %c0_i32 = arith.constant 0 : i32
    %0 = arith.cmpi eq, %arg1, %c0_i32 : i32
    %1 = arith.extui %0 : i1 to i32
    %c0_i32_0 = arith.constant 0 : i32
    %2 = arith.cmpi ne, %1, %c0_i32_0 : i32
    scf.if %2 {
      %c0_12 = arith.constant 0 : index
      %c0_13 = arith.constant 0 : index
      %c0_14 = arith.constant 0 : index
      %26 = vector.load %arg3[%c0_12, %c0_13, %c0_14] : memref<1x8x32xf32, #tpu.memory_space<vmem>>, vector<1x8x32xf32>
      %27 = vector.shape_cast %26 : vector<1x8x32xf32> to vector<8x32xf32>
      %28 = arith.truncf %27 : vector<8x32xf32> to vector<8x32xbf16>
      %c0_15 = arith.constant 0 : index
      %c0_16 = arith.constant 0 : index
      %c0_17 = arith.constant 0 : index
      %29 = vector.load %arg2[%c0_15, %c0_16, %c0_17] : memref<1x8x32xf32, #tpu.memory_space<vmem>>, vector<1x8x32xf32>
      %30 = vector.shape_cast %29 : vector<1x8x32xf32> to vector<8x32xf32>
      %c0_i32_18 = arith.constant 0 : i32
      %31 = arith.truncf %30 : vector<8x32xf32> to vector<8x32xbf16>
      %cst_19 = arith.constant dense<0.000000e+00> : vector<8x8xf32>
      %32 = tpu.matmul %28, %31, %cst_19 {dimension_numbers = #tpu.dot_dimension_numbers<[1], [1], [0], [0], [0, 0, 1, 0], [], []>} : vector<8x32xbf16>, vector<8x32xbf16>, vector<8x8xf32> -> vector<8x8xf32>
      %cst_20 = arith.constant 0.176776692 : f32
      %33 = vector.broadcast %cst_20 : f32 to vector<8x8xf32>
      %34 = arith.mulf %32, %33 : vector<8x8xf32>
      %cst_21 = arith.constant dense<0xFF800000> : vector<8xf32>
      %35 = vector.multi_reduction <maximumf>, %34, %cst_21 [1] : vector<8x8xf32> to vector<8xf32>
      %cst_22 = arith.constant 0xFF800000 : f32
      %36 = vector.broadcast %cst_22 : f32 to vector<8xf32>
      %37 = arith.maximumf %36, %35 : vector<8xf32>
      %38 = vector.shape_cast %37 : vector<8xf32> to vector<8x1xf32>
      %39 = vector.broadcast %38 : vector<8x1xf32> to vector<8x8xf32>
      %40 = arith.subf %34, %39 : vector<8x8xf32>
      %41 = math.exp %40 : vector<8x8xf32>
      %cst_23 = arith.constant dense<0.000000e+00> : vector<8xf32>
      %42 = vector.multi_reduction <add>, %41, %cst_23 [1] : vector<8x8xf32> to vector<8xf32>
      %43 = vector.shape_cast %42 : vector<8xf32> to vector<8x1xf32>
      %44 = vector.broadcast %43 : vector<8x1xf32> to vector<8x8xf32>
      %45 = arith.divf %41, %44 : vector<8x8xf32>
      %46 = arith.truncf %45 : vector<8x8xf32> to vector<8x8xbf16>
      %cst_24 = arith.constant dense<0.000000e+00> : vector<8x32xf32>
      %47 = tpu.matmul %46, %28, %cst_24 {dimension_numbers = #tpu.dot_dimension_numbers<[0], [0], [1], [1], [0, 1, 1, 1], [], []>} : vector<8x8xbf16>, vector<8x32xbf16>, vector<8x32xf32> -> vector<8x32xf32>
      %48 = arith.addf %30, %47 : vector<8x32xf32>
      %c1_i32 = arith.constant 1 : i32
      %49 = arith.truncf %48 : vector<8x32xf32> to vector<8x32xbf16>
      %cst_25 = arith.constant dense<0.000000e+00> : vector<8x8xf32>
      %50 = tpu.matmul %28, %49, %cst_25 {dimension_numbers = #tpu.dot_dimension_numbers<[1], [1], [0], [0], [0, 0, 1, 0], [], []>} : vector<8x32xbf16>, vector<8x32xbf16>, vector<8x8xf32> -> vector<8x8xf32>
      %cst_26 = arith.constant 0.176776692 : f32
      %51 = vector.broadcast %cst_26 : f32 to vector<8x8xf32>
      %52 = arith.mulf %50, %51 : vector<8x8xf32>
      %cst_27 = arith.constant dense<0xFF800000> : vector<8xf32>
      %53 = vector.multi_reduction <maximumf>, %52, %cst_27 [1] : vector<8x8xf32> to vector<8xf32>
      %cst_28 = arith.constant 0xFF800000 : f32
      %54 = vector.broadcast %cst_28 : f32 to vector<8xf32>
      %55 = arith.maximumf %54, %53 : vector<8xf32>
      %56 = vector.shape_cast %55 : vector<8xf32> to vector<8x1xf32>
      %57 = vector.broadcast %56 : vector<8x1xf32> to vector<8x8xf32>
      %58 = arith.subf %52, %57 : vector<8x8xf32>
      %59 = math.exp %58 : vector<8x8xf32>
      %cst_29 = arith.constant dense<0.000000e+00> : vector<8xf32>
      %60 = vector.multi_reduction <add>, %59, %cst_29 [1] : vector<8x8xf32> to vector<8xf32>
      %61 = vector.shape_cast %60 : vector<8xf32> to vector<8x1xf32>
      %62 = vector.broadcast %61 : vector<8x1xf32> to vector<8x8xf32>
      %63 = arith.divf %59, %62 : vector<8x8xf32>
      %64 = arith.truncf %63 : vector<8x8xf32> to vector<8x8xbf16>
      %cst_30 = arith.constant dense<0.000000e+00> : vector<8x32xf32>
      %65 = tpu.matmul %64, %28, %cst_30 {dimension_numbers = #tpu.dot_dimension_numbers<[0], [0], [1], [1], [0, 1, 1, 1], [], []>} : vector<8x8xbf16>, vector<8x32xbf16>, vector<8x32xf32> -> vector<8x32xf32>
      %66 = arith.addf %48, %65 : vector<8x32xf32>
      %c2_i32 = arith.constant 2 : i32
      %67 = arith.truncf %66 : vector<8x32xf32> to vector<8x32xbf16>
      %cst_31 = arith.constant dense<0.000000e+00> : vector<8x8xf32>
      %68 = tpu.matmul %28, %67, %cst_31 {dimension_numbers = #tpu.dot_dimension_numbers<[1], [1], [0], [0], [0, 0, 1, 0], [], []>} : vector<8x32xbf16>, vector<8x32xbf16>, vector<8x8xf32> -> vector<8x8xf32>
      %cst_32 = arith.constant 0.176776692 : f32
      %69 = vector.broadcast %cst_32 : f32 to vector<8x8xf32>
      %70 = arith.mulf %68, %69 : vector<8x8xf32>
      %cst_33 = arith.constant dense<0xFF800000> : vector<8xf32>
      %71 = vector.multi_reduction <maximumf>, %70, %cst_33 [1] : vector<8x8xf32> to vector<8xf32>
      %cst_34 = arith.constant 0xFF800000 : f32
      %72 = vector.broadcast %cst_34 : f32 to vector<8xf32>
      %73 = arith.maximumf %72, %71 : vector<8xf32>
      %74 = vector.shape_cast %73 : vector<8xf32> to vector<8x1xf32>
      %75 = vector.broadcast %74 : vector<8x1xf32> to vector<8x8xf32>
      %76 = arith.subf %70, %75 : vector<8x8xf32>
      %77 = math.exp %76 : vector<8x8xf32>
      %cst_35 = arith.constant dense<0.000000e+00> : vector<8xf32>
      %78 = vector.multi_reduction <add>, %77, %cst_35 [1] : vector<8x8xf32> to vector<8xf32>
      %79 = vector.shape_cast %78 : vector<8xf32> to vector<8x1xf32>
      %80 = vector.broadcast %79 : vector<8x1xf32> to vector<8x8xf32>
      %81 = arith.divf %77, %80 : vector<8x8xf32>
      %82 = arith.truncf %81 : vector<8x8xf32> to vector<8x8xbf16>
      %cst_36 = arith.constant dense<0.000000e+00> : vector<8x32xf32>
      %83 = tpu.matmul %82, %28, %cst_36 {dimension_numbers = #tpu.dot_dimension_numbers<[0], [0], [1], [1], [0, 1, 1, 1], [], []>} : vector<8x8xbf16>, vector<8x32xbf16>, vector<8x32xf32> -> vector<8x32xf32>
      %84 = arith.addf %66, %83 : vector<8x32xf32>
      %c3_i32 = arith.constant 3 : i32
      %85 = arith.truncf %84 : vector<8x32xf32> to vector<8x32xbf16>
      %cst_37 = arith.constant dense<0.000000e+00> : vector<8x8xf32>
      %86 = tpu.matmul %28, %85, %cst_37 {dimension_numbers = #tpu.dot_dimension_numbers<[1], [1], [0], [0], [0, 0, 1, 0], [], []>} : vector<8x32xbf16>, vector<8x32xbf16>, vector<8x8xf32> -> vector<8x8xf32>
      %cst_38 = arith.constant 0.176776692 : f32
      %87 = vector.broadcast %cst_38 : f32 to vector<8x8xf32>
      %88 = arith.mulf %86, %87 : vector<8x8xf32>
      %cst_39 = arith.constant dense<0xFF800000> : vector<8xf32>
      %89 = vector.multi_reduction <maximumf>, %88, %cst_39 [1] : vector<8x8xf32> to vector<8xf32>
      %cst_40 = arith.constant 0xFF800000 : f32
      %90 = vector.broadcast %cst_40 : f32 to vector<8xf32>
      %91 = arith.maximumf %90, %89 : vector<8xf32>
      %92 = vector.shape_cast %91 : vector<8xf32> to vector<8x1xf32>
      %93 = vector.broadcast %92 : vector<8x1xf32> to vector<8x8xf32>
      %94 = arith.subf %88, %93 : vector<8x8xf32>
      %95 = math.exp %94 : vector<8x8xf32>
      %cst_41 = arith.constant dense<0.000000e+00> : vector<8xf32>
      %96 = vector.multi_reduction <add>, %95, %cst_41 [1] : vector<8x8xf32> to vector<8xf32>
      %97 = vector.shape_cast %96 : vector<8xf32> to vector<8x1xf32>
      %98 = vector.broadcast %97 : vector<8x1xf32> to vector<8x8xf32>
      %99 = arith.divf %95, %98 : vector<8x8xf32>
      %100 = arith.truncf %99 : vector<8x8xf32> to vector<8x8xbf16>
      %cst_42 = arith.constant dense<0.000000e+00> : vector<8x32xf32>
      %101 = tpu.matmul %100, %28, %cst_42 {dimension_numbers = #tpu.dot_dimension_numbers<[0], [0], [1], [1], [0, 1, 1, 1], [], []>} : vector<8x8xbf16>, vector<8x32xbf16>, vector<8x32xf32> -> vector<8x32xf32>
      %102 = arith.addf %84, %101 : vector<8x32xf32>
      %103 = arith.truncf %102 : vector<8x32xf32> to vector<8x32xbf16>
      %c0_43 = arith.constant 0 : index
      %c0_44 = arith.constant 0 : index
      %104 = vector.load %arg4[%c0_43, %c0_44] : memref<32x96xbf16, #tpu.memory_space<vmem>>, vector<32x96xbf16>
      %cst_45 = arith.constant dense<0.000000e+00> : vector<8x96xf32>
      %105 = tpu.matmul %103, %104, %cst_45 {dimension_numbers = #tpu.dot_dimension_numbers<[1], [0], [0], [1], [0, 0, 1, 1], [], []>} : vector<8x32xbf16>, vector<32x96xbf16>, vector<8x96xf32> -> vector<8x96xf32>
      %c0_46 = arith.constant 0 : index
      %c0_47 = arith.constant 0 : index
      %106 = vector.load %arg10[%c0_46, %c0_47] : memref<8x96xf32, #tpu.memory_space<vmem>>, vector<8x96xf32>
      tpu.vector_store %arg10[%c0_46, %c0_47], %105 {strides = array<i32>} : memref<8x96xf32, #tpu.memory_space<vmem>>, vector<8x96xf32>,
      %c0_48 = arith.constant 0 : index
      %c0_49 = arith.constant 0 : index
      %107 = vector.load %arg5[%c0_48, %c0_49] : memref<32x96xbf16, #tpu.memory_space<vmem>>, vector<32x96xbf16>
      %cst_50 = arith.constant dense<0.000000e+00> : vector<8x96xf32>
      %108 = tpu.matmul %103, %107, %cst_50 {dimension_numbers = #tpu.dot_dimension_numbers<[1], [0], [0], [1], [0, 0, 1, 1], [], []>} : vector<8x32xbf16>, vector<32x96xbf16>, vector<8x96xf32> -> vector<8x96xf32>
      %c0_51 = arith.constant 0 : index
      %c0_52 = arith.constant 0 : index
      %109 = vector.load %arg6[%c0_51, %c0_52] : memref<1x96xf32, #tpu.memory_space<vmem>>, vector<1x96xf32>
      %110 = vector.broadcast %109 : vector<1x96xf32> to vector<8x96xf32>
      %111 = arith.addf %108, %110 : vector<8x96xf32>
      %c0_53 = arith.constant 0 : index
      %c0_54 = arith.constant 0 : index
      %112 = vector.load %arg11[%c0_53, %c0_54] : memref<8x96xf32, #tpu.memory_space<vmem>>, vector<8x96xf32>
      tpu.vector_store %arg11[%c0_53, %c0_54], %111 {strides = array<i32>} : memref<8x96xf32, #tpu.memory_space<vmem>>, vector<8x96xf32>,
    } else {
    }
    %c8_i32 = arith.constant 8 : i32
    %3 = arith.muli %arg1, %c8_i32 : i32
    %4 = tpu.assume_multiple %3, 8 : i32
    %5 = arith.index_cast %4 : i32 to index
    %c0 = arith.constant 0 : index
    %6 = vector.load %arg10[%5, %c0] : memref<8x96xf32, #tpu.memory_space<vmem>>, vector<8x96xf32>
    %7 = vector.shape_cast %6 : vector<8x96xf32> to vector<8x1x96xf32>
    %c0_1 = arith.constant 0 : index
    %c0_2 = arith.constant 0 : index
    %8 = vector.load %arg11[%c0_1, %c0_2] : memref<8x96xf32, #tpu.memory_space<vmem>>, vector<8x96xf32>
    %9 = vector.shape_cast %8 : vector<8x96xf32> to vector<1x8x96xf32>
    %10 = vector.broadcast %7 : vector<8x1x96xf32> to vector<8x8x96xf32>
    %11 = vector.broadcast %9 : vector<1x8x96xf32> to vector<8x8x96xf32>
    %12 = arith.addf %10, %11 : vector<8x8x96xf32>
    %cst = arith.constant 0.000000e+00 : f32
    %13 = vector.broadcast %cst : f32 to vector<8x8x96xf32>
    %14 = arith.maximumf %12, %13 : vector<8x8x96xf32>
    %15 = vector.shape_cast %14 : vector<8x8x96xf32> to vector<64x96xf32>
    %16 = arith.truncf %15 : vector<64x96xf32> to vector<64x96xbf16>
    %c0_3 = arith.constant 0 : index
    %c0_4 = arith.constant 0 : index
    %17 = vector.load %arg7[%c0_3, %c0_4] : memref<96x16xbf16, #tpu.memory_space<vmem>>, vector<96x16xbf16>
    %cst_5 = arith.constant dense<0.000000e+00> : vector<64x16xf32>
    %18 = tpu.matmul %16, %17, %cst_5 {dimension_numbers = #tpu.dot_dimension_numbers<[1], [0], [0], [1], [0, 0, 1, 1], [], []>} : vector<64x96xbf16>, vector<96x16xbf16>, vector<64x16xf32> -> vector<64x16xf32>
    %c0_6 = arith.constant 0 : index
    %c0_7 = arith.constant 0 : index
    %19 = vector.load %arg8[%c0_6, %c0_7] : memref<1x16xf32, #tpu.memory_space<vmem>>, vector<1x16xf32>
    %20 = vector.broadcast %19 : vector<1x16xf32> to vector<64x16xf32>
    %21 = arith.addf %18, %20 : vector<64x16xf32>
    %22 = vector.shape_cast %21 : vector<64x16xf32> to vector<8x8x16xf32>
    %c0_8 = arith.constant 0 : index
    %c0_9 = arith.constant 0 : index
    %c0_10 = arith.constant 0 : index
    %c0_11 = arith.constant 0 : index
    %23 = vector.load %arg9[%c0_8, %c0_9, %c0_10, %c0_11] : memref<1x8x8x16xf32, #tpu.memory_space<vmem>>, vector<1x8x8x16xf32>
    %24 = vector.shape_cast %23 : vector<1x8x8x16xf32> to vector<8x8x16xf32>
    %25 = vector.shape_cast %22 : vector<8x8x16xf32> to vector<1x8x8x16xf32>
    tpu.vector_store %arg9[%c0_8, %c0_9, %c0_10, %c0_11], %25 {strides = array<i32>} : memref<1x8x8x16xf32, #tpu.memory_space<vmem>>, vector<1x8x8x16xf32>,
    return
  }
  func.func @transform_0(%arg0: i32, %arg1: i32) -> (i32, i32, i32) {
    %c0_i32 = arith.constant 0 : i32
    %c0_i32_0 = arith.constant 0 : i32
    %c0_i32_1 = arith.constant 0 : i32
    return %arg0, %c0_i32, %c0_i32_0 : i32, i32, i32
  }
  func.func @transform_1(%arg0: i32, %arg1: i32) -> (i32, i32, i32) {
    %c0_i32 = arith.constant 0 : i32
    %c0_i32_0 = arith.constant 0 : i32
    %c0_i32_1 = arith.constant 0 : i32
    return %arg0, %c0_i32, %c0_i32_0 : i32, i32, i32
  }
  func.func @transform_2(%arg0: i32, %arg1: i32) -> (i32, i32) {
    %c0_i32 = arith.constant 0 : i32
    %c0_i32_0 = arith.constant 0 : i32
    %c0_i32_1 = arith.constant 0 : i32
    return %c0_i32, %c0_i32_0 : i32, i32
  }
  func.func @transform_3(%arg0: i32, %arg1: i32) -> (i32, i32) {
    %c0_i32 = arith.constant 0 : i32
    %c0_i32_0 = arith.constant 0 : i32
    %c0_i32_1 = arith.constant 0 : i32
    return %c0_i32, %c0_i32_0 : i32, i32
  }
  func.func @transform_4(%arg0: i32, %arg1: i32) -> (i32, i32) {
    %c0_i32 = arith.constant 0 : i32
    %c0_i32_0 = arith.constant 0 : i32
    %c0_i32_1 = arith.constant 0 : i32
    return %c0_i32, %c0_i32_0 : i32, i32
  }
  func.func @transform_5(%arg0: i32, %arg1: i32) -> (i32, i32) {
    %c0_i32 = arith.constant 0 : i32
    %c0_i32_0 = arith.constant 0 : i32
    %c0_i32_1 = arith.constant 0 : i32
    return %c0_i32, %c0_i32_0 : i32, i32
  }
  func.func @transform_6(%arg0: i32, %arg1: i32) -> (i32, i32) {
    %c0_i32 = arith.constant 0 : i32
    %c0_i32_0 = arith.constant 0 : i32
    %c0_i32_1 = arith.constant 0 : i32
    return %c0_i32, %c0_i32_0 : i32, i32
  }
  func.func @transform_7(%arg0: i32, %arg1: i32) -> (i32, i32, i32, i32) {
    %c0_i32 = arith.constant 0 : i32
    %c0_i32_0 = arith.constant 0 : i32
    %c0_i32_1 = arith.constant 0 : i32
    return %arg0, %arg1, %c0_i32, %c0_i32_0 : i32, i32, i32, i32
  }
}

</mosaic_0001>

<bundles_post_ra>
// kernel: tpu_custom_call.1
= control target key start
LH: loop header
LB: loop body
LE: loop exit
PB: predicated region body
PF: predicated region fallthrough
CT: control target
= control target key end

     0   :  { %12 = vsyncpa [#allocation5], 0  ;;  %s1995_s0 = inlined_call_operand.vmem [shape: f32[2,8,32], index: 0, kind: input, shape index: {}]   ;;  %s1996_s1 = inlined_call_operand.vmem [shape: f32[4,8,32], index: 1, kind: input, shape index: {}]   ;;  %s1997_s2 = inlined_call_operand.hbm [shape: bf16[32,96], index: 2, kind: input, shape index: {}]   ;;  %s1998_s3 = inlined_call_operand.vmem [shape: bf16[32,96], index: 3, kind: input, shape index: {}]   ;;  %s1999_s4 = inlined_call_operand.vmem [shape: f32[1,96], index: 4, kind: input, shape index: {}]   ;;  %s2000_s5 = inlined_call_operand.vmem [shape: bf16[96,16], index: 5, kind: input, shape index: {}]   ;;  %s2001_s6 = inlined_call_operand.vmem [shape: f32[1,16], index: 6, kind: input, shape index: {}]   ;;  %s2002_s7 = inlined_call_operand.hbm [shape: f32[2,8,8,16], index: 7, kind: output, shape index: {}]  }
   0x1   :  { %13 = vsyncpa [#allocation6], 0 }
   0x2   :  { %15 = vsyncpa [#allocation6 + $0x1], 0  ;;  %s1722_s24 = smov 0   ;;  %s1724_s25 = smov 0  }
   0x3   :  { %s1726_s26 = smov 0   ;;  %s1728_s27 = smov 0  }
   0x4   :  { %s1730_s28 = smov 0   ;;  %s1732_s29 = smov 0  }
   0x5 LB: > { %s1302_s30 = sadd.s32 4294967295, %s1671_s29   ;;  %s1303_s8 = sadd.s32 4294967294, %s1671_s29   ;;  %s1671_s29 = sphi %s1732_s29, %s21_s29   ;;  %s1667_s28 = sphi %s1730_s28, %s2020_s28   ;;  %s1663_s27 = sphi %s1728_s27, %s2019_s27   ;;  %s1659_s26 = sphi %s1726_s26, %s2018_s26   ;;  %s1655_s25 = sphi %s1724_s25, %s2017_s25   ;;  %s1651_s24 = sphi %s1722_s24, %s2016_s24  }
   0x6   : > { %s33_s9 = sadd.s32 1, %s1667_s28  ;;  %s199_s10 = sadd.s32 1, %s1659_s26 }
   0x7   : > { %p35_p0 = scmp.ge.s32.totalorder %s33_s9, 2  ;;  %p209_p1 = scmp.ne.s32.totalorder %s1659_s26, %s1655_s25 }
   0x8   : > { %p210_p2 = scmp.eq.s32.totalorder %s1302_s30, 1  ;;  %p215_p3 = scmp.ne.s32.totalorder %s1655_s25, %s1651_s24 }
   0x9   : > { %s2022_s9 = smov (%p35_p0, %s33_s9), 0  ;;  %p216_p5 = scmp.eq.s32.totalorder %s1303_s8, 1 }
   0xa   : > { %p1762_p4 = por %p210_p2, %p209_p1  ;;  %s194_s12 = ssub.s32 %s1667_s28, %s2022_s9 }
   0xb   : > { %p1304_p6 = scmp.ge.s32.totalorder %s1671_s29, 1  ;;  %p197_p7 = scmp.eq.s32.totalorder %s194_s12, 0 }
   0xc   : > { %s2007_s11 = scalar_select %p1762_p4, 1, 0 }
   0xd   : > { %p1769_p8 = por %p216_p5, %p215_p3  ;;  %p223_p9 = scmp.lt.s32.totalorder %s1671_s29, 3 }
   0xe   : > { %s1775_s14 = scalar_select %p197_p7, %s1659_s26, %s199_s10  }
   0xf   : > { %s2008_s13 = scalar_select %p1769_p8, 1, 0 }
  0x10   : > { %p1777_p10 = pnand %p1304_p6, %p223_p9  ;;  %p1781_p11 = scmp.eq.s32.totalorder %s1302_s30, 0 }
  0x11   : > { %s1673_s17 = smov [#allocation4]   ;;  %s1561_s22 = scalar_lea.hbm %s1997_s2, 256 }
  0x12   : > { %s2009_s15 = scalar_select %p1777_p10, 1, 0 }
  0x13   : > { %s2010_s16 = scalar_select %p1781_p11, 1, 0 }
  0x14   : > { %p1466_p12 = pneg %p1777_p10  ;;  %s235_s18 = sshll.u32 %s1673_s17, 4  ;;  %s236_s18 = int_to_ptr.vmem [resolvable:$true] %s235_s18 }
  0x15   : > { %p1562_p0 = scmp.ne.s32.totalorder %s1997_s2, %s1561_s22  ;;  %p1568_p5 = scmp.lt.u32.totalorder %s1561_s22, %s1997_s2 }
  0x16   : > { %p1789_p13 = pnand %p1781_p11, %p1466_p12 }
  0x18   : > { %p1563_p1 = pneg %p1789_p13 }
  0x1a   : > { %p1564_p2 = pnand %p1563_p1, %p1562_p0 }
  0x1c   : > { %p1565_p3 = pneg %p1564_p2 }
  0x1e   : > { %p1570_p6 = pnand %p1568_p5, %p1565_p3 }
  0x20   : > { %1573 = shalt.err (!%p1570_p6)
}
  0x21   : > { %s1574_s12 = scalar_lea.vmem %s236_s18, 256  ;;  %p1582_p8 = scmp.lt.s32.totalorder %s236_s18, %s236_s18 }
  0x22   : > { %p1575_p7 = scmp.ne.s32.totalorder %s236_s18, %s1574_s12  ;;  %p1583_p4 = scmp.lt.s32.totalorder %s1574_s12, %s1574_s12 }
  0x24   : > { %p1577_p9 = pnand %p1575_p7, %p1563_p1  ;;  %p1584_p11 = por %p1583_p4, %p1582_p8 }
  0x26   : > { %p1578_p12 = pneg %p1577_p9 }
  0x28   : > { %p1585_p10 = pnand %p1584_p11, %p1578_p12 }
  0x2a   : > { %1588 = shalt.err (!%p1585_p10)
}
  0x2b   : > { %s1674_s17 = smov 64   ;;  %s1675_s20 = smov 4  }
  0x2c   : > { %1469 = dma.hbm_to_vmem [thread:$0]  (!%p1789_p13), %s1997_s2, 256, %s236_s18, [#allocation5], %s1674_s17, %s1674_s17, %s1675_s20  }
  0x2d   : > { %p2012_p0 = scmp.ne.s32.totalorder %s2009_s15, 0 }
  0x2e   : > { %p2013_p2 = scmp.ne.s32.totalorder (!%p2012_p0), %s2010_s16, 0 }
  0x2f   : > { %277 = sbr.rel (%p2012_p0) target bundleno = 3968 (0xf80), region = 48 }
  0x36   : > { %1642 = dma.done.wait (%p2013_p2), [#allocation5], 256  }
  0x37   : > { %1644 = vsyncadd (%p2013_p2), [#allocation5], 4294967040  ;;  %p312_p4 = scmp.lt.s32.totalorder %s1663_s27, 1  ;;  %v1676_v0 = vmov 0.0   ;;  %vm1677_vm0 = vmmov 0   ;;  %p316_p8 = scmp.lt.s32.totalorder %s1663_s27, 3 }
  0x38   : > { %1376 = vmatprep.subr.bf16.mxu0 %v1676_v0  ;;  %1378 = vmatprep.mubr.msk.bf16.mxu0 %vm1677_vm0, %v1676_v0  ;;  %vm330_vm1 = vcmask 261120   ;;  %vm378_vm2 = vcmask 64512   ;;  %vm410_vm3 = vcmask 1043456   ;;  %vm865_vm4 = vcmask 785408   ;;  %s1343_s10 = sshll.u32 %s1663_s27, 10  ;;  %p2014_p11 = scmp.ne.s32.totalorder %s2007_s11, 0 }
  0x39   : > { %s313_s15 = scalar_select %p312_p4, %s1663_s27, 1  ;;  %1400 = vmatprep.subr.bf16.mxu1 %v1676_v0  ;;  %1402 = vmatprep.mubr.msk.bf16.mxu1 %vm1677_vm0, %v1676_v0  ;;  %vm1178_vm5 = vcmask 130048  }
  0x3a   : > { %s317_s16 = scalar_select %p316_p8, %s1663_s27, 3 }
  0x3b   : > { %s1310_s18 = sshll.u32 %s313_s15, 3  ;;  %s1940_s21 = scalar_lea.hbm %s2002_s7, %s1343_s10 }
  0x3c   : > { %s315_s30 = scalar_lea.vmem %s1995_s0, %s1310_s18  ;;  %s1311_s8 = sshll.u32 %s317_s16, 3 }
  0x3d   : > { %v328_v1 = vld [vmem:[%s315_s30] sm:$0xff]  ;;  %s319_s17 = scalar_lea.vmem %s1996_s1, %s1311_s8  ;;  %s309_s18 = sand.u32 1, %s1655_s25  }
  0x3e   : > { %v329_v2 = vpack.c.bf16 %v328_v1, %v328_v1  ;;  %v326_v4 = vld [vmem:[%s319_s17] sm:$0xff]  ;;  %s1309_s19 = sshll.u32 %s309_s18, 6  ;;  %s1949_s27 = scalar_lea.sflag [#allocation6], %s309_s18 }
  0x3f   : > { %v1833_v5 = vpack.c.bf16 %v326_v4, %v326_v4  ;;  %s311_s8 = scalar_lea.vmem [#allocation7], %s1309_s19  ;;  %s1679_s15 = smov [#allocation7]  }
  0x40   : > { %v335_v3 = vsel %vm330_vm1, %v329_v2, 0  ;;  %s1203_s12 = sshll.u32 %s311_s8, 4  ;;  %s1593_s16 = sshll.u32 %s1679_s15, 4  ;;  %s1942_s12 = int_to_ptr.vmem [resolvable:$true] %s1203_s12  ;;  %s1594_s16 = int_to_ptr.vmem [resolvable:$false] %s1593_s16 }
  0x41   : > { %1377 = vmatpush3.bf16.xpose.msra.mxu0 %v335_v3  ;;  %v1842_v17 = vsel %vm410_vm3, %v1833_v5, 0  ;;  %s1589_s23 = scalar_lea.vmem %s1942_s12, 1024  ;;  %s1595_s19 = scalar_lea.vmem %s1594_s16, 2048 }
  0x42   : > { %1382 = vmatprep.subr.bf16.mxu0 %v1676_v0  ;;  %p1590_p10 = scmp.ne.s32.totalorder %s1942_s12, %s1589_s23  ;;  %p1596_p3 = scmp.lt.s32.totalorder %s1942_s12, %s1594_s16 }
  0x43   : > { %p1597_p5 = scmp.lt.s32.totalorder %s1595_s19, %s1589_s23 }
  0x44   : > { %p1591_p13 = pnand %p1590_p10, %p2014_p11 }
  0x45   : > { %p1598_p6 = por %p1597_p5, %p1596_p3 }
  0x46   : > { %p1592_p1 = pneg %p1591_p13 }
  0x48   : > { %1379 = vmatmul.mubr.msk.bf16.vlgmr.msra.gmra.mrb[0].mxu0 %vm330_vm1, %v1833_v5  ;;  %p1599_p7 = pnand %p1598_p6, %p1592_p1 }
  0x49   : > { %1384 = vmatprep.mubr.msk.bf16.mxu0 %vm1677_vm0, %v1676_v0  ;;  %1383 = vmatpush3.bf16.msra.mxu0 %v1842_v17 }
  0x4a   : > { %1388 = vmatprep.subr.bf16.mxu0 %v1676_v0 }
 0x11b   : > { %v371_v6 = vpop.f32.mrb[0].mxu0 }
 0x11c   : > { %v377_v7 = vmul.f32 0.17677669, %v371_v6  ;;  %v1380_v8 = vpop.f32.mrb[1].mxu0 }
 0x11d   : > { %v374_v9 = vpop.f32.mrb[2].mxu0 }
 0x11e   : > { %v1381_v10 = vpop.f32.mrb[3].mxu0  ;;  %v379_v11 = vsel %vm378_vm2, %v377_v7, -inf }
 0x11f   : > { %380 = vmax.xlane.f32.xlu0 %v379_v11 }
 0x1ac   : > { %v381_v12 = vpop.xlane.xlu0 %380 }
 0x1ad   : > { %v382_v13 = vsub.f32 %v377_v7, %v381_v12 }
 0x1af   : > { %v383_v14 = vmul.f32 1.442695, %v382_v13 }
 0x1b1   : > { %1545 = vpow2.f32 %v383_v14 }
 0x1bb   : > { %v1546_v15 = vpop.eup %1545 }
 0x1bc   : > { %v385_v16 = vsel %vm378_vm2, %v1546_v15, 0.0 }
 0x1bd   : > { %386 = vadd.xlane.f32.xlu0 %v385_v16 }
 0x24a   : > { %v387_v18 = vpop.xlane.xlu0 %386 }
 0x24b   : > { %1547 = vrcp.f32 %v387_v18 }
 0x255   : > { %v1548_v19 = vpop.eup %1547 }
 0x256   : > { %v389_v20 = vmul.f32 %v1548_v19, %v1546_v15 }
 0x258   : > { %v390_v21 = vpack.c.bf16 %v389_v20, %v389_v20 }
 0x25a   : > { %391 = vxpose.xlu1.c.b16.start.end [1/1] (short) (narrow) %v390_v21, 16 }
 0x2c0   : > { %v399_v22 = vpop.trf.xlu1 }
 0x2c1   : > { %1385 = vmatmul.mubr.msk.bf16.vlgmr.msra.gmra.mrb[4].mxu0 %vm378_vm2, %v399_v22 }
 0x2c2   : > { %1390 = vmatprep.mubr.msk.bf16.mxu0 %vm1677_vm0, %v1676_v0 }
 0x394   : > { %v447_v23 = vpop.f32.mrb[4].mxu0 }
 0x395   : > { %v453_v24 = vadd.f32 %v447_v23, %v328_v1  ;;  %v1386_v25 = vpop.f32.mrb[5].mxu0 }
 0x396   : > { %v450_v26 = vpop.f32.mrb[6].mxu0 }
 0x397   : > { %v454_v27 = vpack.c.bf16 %v453_v24, %v453_v24  ;;  %v1387_v28 = vpop.f32.mrb[7].mxu0 }
 0x399   : > { %v456_v29 = vsel %vm330_vm1, %v454_v27, 0 }
 0x39a   : > { %1389 = vmatpush3.bf16.xpose.msra.mxu0 %v456_v29  ;;  %v1535_v29 = vld [vmem:[%s1998_s3] sm:$0xff]  }
 0x39b   : > { %1394 = vmatprep.subr.bf16.mxu0 %v1676_v0 }
 0x3a1   : > { %1391 = vmatmul.mubr.msk.bf16.vlgmr.msra.gmra.mrb[8].mxu0 %vm330_vm1, %v1833_v5 }
 0x3a2   : > { %1395 = vmatpush3.bf16.msra.mxu0 %v1842_v17  ;;  %1396 = vmatprep.mubr.msk.bf16.mxu0 %vm1677_vm0, %v1676_v0 }
 0x3a3   : > { %1406 = vmatprep.subr.bf16.mxu0 %v1676_v0 }
 0x474   : > { %v492_v30 = vpop.f32.mrb[8].mxu0 }
 0x475   : > { %v498_v31 = vmul.f32 0.17677669, %v492_v30  ;;  %v1392_v32 = vpop.f32.mrb[9].mxu0 }
 0x476   : > { %v495_v33 = vpop.f32.mrb[10].mxu0  ;;  %v1537_v32 = vld [vmem:[%s1998_s3 + $0x8] sm:$0xff]  }
 0x477   : > { %v1393_v34 = vpop.f32.mrb[11].mxu0  ;;  %v499_v35 = vsel %vm378_vm2, %v498_v31, -inf }
 0x478   : > { %500 = vmax.xlane.f32.xlu1 %v499_v35 }
 0x505   : > { %v501_v36 = vpop.xlane.xlu1 %500 }
 0x506   : > { %v502_v37 = vsub.f32 %v498_v31, %v501_v36  ;;  %v1536_v31 = vld [vmem:[#allocation4 + $0x8] sm:$0xff]  }
 0x508   : > { %v503_v38 = vmul.f32 1.442695, %v502_v37 }
 0x50a   : > { %1549 = vpow2.f32 %v503_v38 }
 0x514   : > { %v1550_v39 = vpop.eup %1549 }
 0x515   : > { %v505_v40 = vsel %vm378_vm2, %v1550_v39, 0.0 }
 0x516   : > { %506 = vadd.xlane.f32.xlu0 %v505_v40  ;;  %v1540_v40 = vld [vmem:[%s2000_s5 + $0x10] sm:$0xff]  }
 0x5a3   : > { %v507_v41 = vpop.xlane.xlu0 %506 }
 0x5a4   : > { %1551 = vrcp.f32 %v507_v41  ;;  %v1541_v41 = vld [vmem:[%s2000_s5 + $0x18] sm:$0xff]  }
 0x5ae   : > { %v1552_v42 = vpop.eup %1551 }
 0x5af   : > { %v509_v43 = vmul.f32 %v1552_v42, %v1550_v39  ;;  %v1539_v39 = vld [vmem:[%s2000_s5 + $0x8] sm:$0xff]   ;;  %v1542_v42 = vld [vmem:[%s2000_s5 + $0x20] sm:$0xff]  }
 0x5b1   : > { %v510_v44 = vpack.c.bf16 %v509_v43, %v509_v43  ;;  %v1543_v43 = vld [vmem:[%s2000_s5 + $0x28] sm:$0xff]  }
 0x5b3   : > { %511 = vxpose.xlu0.c.b16.start.end [1/1] (short) (narrow) %v510_v44, 16  ;;  %v1678_v44 = vmov 1966171168  }
 0x619   : > { %v519_v45 = vpop.trf.xlu0 }
 0x61a   : > { %1397 = vmatmul.mubr.msk.bf16.vlgmr.msra.gmra.mrb[12].mxu0 %vm378_vm2, %v519_v45  ;;  %v937_v45 = vunpack.c.l.s4 %v1678_v44 }
 0x61b   : > { %1407 = vmatpush3.bf16.msra.mxu0 %v1842_v17  ;;  %1408 = vmatprep.mubr.msk.bf16.mxu0 %vm1677_vm0, %v1676_v0 }
 0x61c   : > { %1418 = vmatprep.subr.bf16.mxu0 %v1676_v0 }
 0x6ed   : > { %v564_v46 = vpop.f32.mrb[12].mxu0 }
 0x6ee   : > { %v570_v47 = vadd.f32 %v564_v46, %v453_v24  ;;  %v1398_v48 = vpop.f32.mrb[13].mxu0  ;;  %v939_v46 = vlaneseq }
 0x6ef   : > { %v567_v49 = vpop.f32.mrb[14].mxu0 }
 0x6f0   : > { %v1399_v50 = vpop.f32.mrb[15].mxu0  ;;  %v571_v51 = vpack.c.bf16 %v570_v47, %v570_v47 }
 0x6f2   : > { %v573_v52 = vsel %vm330_vm1, %v571_v51, 0 }
 0x6f3   : > { %1401 = vmatpush3.bf16.xpose.msra.mxu1 %v573_v52 }
 0x6f4   : > { %1412 = vmatprep.subr.bf16.mxu1 %v1676_v0 }
 0x6fa   : > { %1403 = vmatmul.mubr.msk.bf16.vlgmr.msra.gmra.mrb[0].mxu1 %vm330_vm1, %v1833_v5 }
 0x6fb   : > { %1414 = vmatprep.mubr.msk.bf16.mxu1 %vm1677_vm0, %v1676_v0 }
 0x7cd   : > { %v609_v53 = vpop.f32.mrb[0].mxu1 }
 0x7ce   : > { %v615_v54 = vmul.f32 0.17677669, %v609_v53  ;;  %v1404_v55 = vpop.f32.mrb[1].mxu1  ;;  %v938_v53 = vunpack.c.0.s8 %v937_v45 }
 0x7cf   : > { %v612_v56 = vpop.f32.mrb[2].mxu1 }
 0x7d0   : > { %v1405_v57 = vpop.f32.mrb[3].mxu1  ;;  %v616_v58 = vsel %vm378_vm2, %v615_v54, -inf }
 0x7d1   : > { %617 = vmax.xlane.f32.xlu1 %v616_v58 }
 0x85e   : > { %v618_v59 = vpop.xlane.xlu1 %617 }
 0x85f   : > { %v619_v60 = vsub.f32 %v615_v54, %v618_v59  ;;  %v940_v54 = vshrl.u32 %v939_v46, 7 }
 0x861   : > { %v620_v61 = vmul.f32 1.442695, %v619_v60  ;;  %v941_v59 = vsub.s32 %v938_v53, %v940_v54 }
 0x863   : > { %1553 = vpow2.f32 %v620_v61 }
 0x86d   : > { %v1554_v62 = vpop.eup %1553 }
 0x86e   : > { %v622_v63 = vsel %vm378_vm2, %v1554_v62, 0.0 }
 0x86f   : > { %623 = vadd.xlane.f32.xlu1 %v622_v63 }
 0x8fc   : > { %v624_v1 = vpop.xlane.xlu1 %623 }
 0x8fd   : > { %1555 = vrcp.f32 %v624_v1 }
 0x907   : > { %v1556_v2 = vpop.eup %1555 }
 0x908   : > { %v626_v3 = vmul.f32 %v1556_v2, %v1554_v62  ;;  %v987_v62 = vsub.s32 0, %v940_v54 }
 0x90a   : > { %v627_v4 = vpack.c.bf16 %v626_v3, %v626_v3 }
 0x90c   : > { %628 = vxpose.xlu1.c.b16.start.end [1/1] (short) (narrow) %v627_v4, 16 }
 0x972   : > { %v636_v6 = vpop.trf.xlu1 }
 0x973   : > { %1409 = vmatmul.mubr.msk.bf16.vlgmr.msra.gmra.mrb[16].mxu0 %vm378_vm2, %v636_v6 }
 0x974   : > { %1419 = vmatpush3.bf16.msra.mxu0 %v1842_v17  ;;  %1420 = vmatprep.mubr.msk.bf16.mxu0 %vm1677_vm0, %v1676_v0 }
 0x975   : > { %1432 = vmatprep.subr.bf16.mxu0 %v1676_v0 }
 0xa46   : > { %v681_v7 = vpop.f32.mrb[16].mxu0 }
 0xa47   : > { %v687_v8 = vadd.f32 %v681_v7, %v570_v47  ;;  %v1410_v9 = vpop.f32.mrb[17].mxu0  ;;  %v1323_v47 = vld [vmem:[%s1999_s4] ss:$0 sm:$0xff] }
 0xa48   : > { %v684_v10 = vpop.f32.mrb[18].mxu0 }
 0xa49   : > { %v688_v11 = vpack.c.bf16 %v687_v8, %v687_v8  ;;  %v1411_v12 = vpop.f32.mrb[19].mxu0 }
 0xa4b   : > { %v690_v13 = vsel %vm330_vm1, %v688_v11, 0 }
 0xa4c   : > { %1413 = vmatpush3.bf16.xpose.msra.mxu1 %v690_v13 }
 0xa4d   : > { %1424 = vmatprep.subr.bf16.mxu1 %v1676_v0 }
 0xa53   : > { %1415 = vmatmul.mubr.msk.bf16.vlgmr.msra.gmra.mrb[4].mxu1 %vm330_vm1, %v1833_v5  ;;  %v1534_v5 = vld [vmem:[#allocation4] sm:$0xff]  }
 0xa54   : > { %1428 = vmatprep.mubr.msk.bf16.mxu1 %vm1677_vm0, %v1676_v0  ;;  %1425 = vmatpush3.bf16.msra.mxu1 %v1534_v5 }
 0xa55   : > { %1426 = vmatprep.subr.bf16.mxu1 %v1676_v0 }
 0xa58   : > { %1427 = vmatpush3.bf16.msra.mxu1 %v1536_v31 }
 0xb26   : > { %v726_v14 = vpop.f32.mrb[4].mxu1 }
 0xb27   : > { %v732_v15 = vmul.f32 0.17677669, %v726_v14  ;;  %v1416_v16 = vpop.f32.mrb[5].mxu1 }
 0xb28   : > { %v729_v17 = vpop.f32.mrb[6].mxu1 }
 0xb29   : > { %v1417_v18 = vpop.f32.mrb[7].mxu1  ;;  %v733_v19 = vsel %vm378_vm2, %v732_v15, -inf }
 0xb2a   : > { %734 = vmax.xlane.f32.xlu0 %v733_v19 }
 0xbb7   : > { %v735_v20 = vpop.xlane.xlu0 %734 }
 0xbb8   : > { %v736_v21 = vsub.f32 %v732_v15, %v735_v20 }
 0xbba   : > { %v737_v22 = vmul.f32 1.442695, %v736_v21 }
 0xbbc   : > { %1557 = vpow2.f32 %v737_v22 }
 0xbc6   : > { %v1558_v23 = vpop.eup %1557 }
 0xbc7   : > { %v739_v24 = vsel %vm378_vm2, %v1558_v23, 0.0 }
 0xbc8   : > { %740 = vadd.xlane.f32.xlu0 %v739_v24 }
 0xc55   : > { %v741_v25 = vpop.xlane.xlu0 %740 }
 0xc56   : > { %1559 = vrcp.f32 %v741_v25 }
 0xc60   : > { %v1560_v26 = vpop.eup %1559 }
 0xc61   : > { %v743_v27 = vmul.f32 %v1560_v26, %v1558_v23 }
 0xc63   : > { %v744_v28 = vpack.c.bf16 %v743_v27, %v743_v27 }
 0xc65   : > { %745 = vxpose.xlu1.c.b16.start.end [1/1] (short) (narrow) %v744_v28, 16 }
 0xccb   : > { %v753_v30 = vpop.trf.xlu1 }
 0xccc   : > { %1421 = vmatmul.mubr.msk.bf16.vlgmr.msra.gmra.mrb[20].mxu0 %vm378_vm2, %v753_v30 }
 0xccd   : > { %1433 = vmatpush3.bf16.msra.mxu0 %v1535_v29  ;;  %1436 = vmatprep.mubr.msk.bf16.mxu0 %vm1677_vm0, %v1676_v0 }
 0xcce   : > { %1434 = vmatprep.subr.bf16.mxu0 %v1676_v0  ;;  %v1538_v0 = vld [vmem:[%s2000_s5] sm:$0xff]  }
 0xccf   : > { %1440 = vmatprep.subr.bf16.mxu1 %v1538_v0 }
 0xcd1   : > { %1435 = vmatpush3.bf16.msra.mxu0 %v1537_v32 }
 0xd9f   : > { %v798_v33 = vpop.f32.mrb[20].mxu0 }
 0xda0   : > { %v804_v34 = vadd.f32 %v798_v33, %v687_v8  ;;  %v1422_v35 = vpop.f32.mrb[21].mxu0 }
 0xda1   : > { %v801_v36 = vpop.f32.mrb[22].mxu0 }
 0xda2   : > { %v805_v37 = vpack.c.bf16 %v804_v34, %v804_v34  ;;  %v1423_v38 = vpop.f32.mrb[23].mxu0 }
 0xda4   : > { %1429 = vmatmul.mubr.msk.bf16.vlgmr.msra.gmra.mrb[8].mxu1 %vm330_vm1, %v805_v37  ;;  %1437 = vmatmul.mubr.msk.bf16.vlgmr.msra.gmra.mrb[24].mxu0 %vm330_vm1, %v805_v37 }
 0xda5   : > { %1441 = vmatpush3.bf16.msra.mxu1 %v1538_v0 }
 0xda6   : > { %1442 = vmatprep.subr.bf16.mxu1 %v1539_v39 }
 0xda9   : > { %1443 = vmatpush3.bf16.msra.mxu1 %v1539_v39 }
 0xdaa   : > { %1444 = vmatprep.subr.bf16.mxu1 %v1540_v40 }
 0xdad   : > { %1445 = vmatpush3.bf16.msra.mxu1 %v1540_v40  ;;  %v1327_v40 = vld [vmem:[%s2001_s6] ss:$0 sm:$0xff] }
 0xdae   : > { %1446 = vmatprep.subr.bf16.mxu1 %v1541_v41 }
 0xdb1   : > { %1447 = vmatpush3.bf16.msra.mxu1 %v1541_v41 }
 0xdb2   : > { %1448 = vmatprep.subr.bf16.mxu1 %v1542_v42 }
 0xdb5   : > { %1449 = vmatpush3.bf16.msra.mxu1 %v1542_v42 }
 0xdb6   : > { %1450 = vmatprep.subr.bf16.mxu1 %v1543_v43 }
 0xdb9   : > { %1451 = vmatpush3.bf16.msra.mxu1 %v1543_v43 }
 0xe77   : > { %v859_v48 = vpop.f32.mrb[8].mxu1  ;;  %v924_v49 = vpop.f32.mrb[24].mxu0 }
 0xe78   : > { %866 = vst.msk [vmem:[#allocation2] sm:$0xff] %vm865_vm4, %v859_v48  ;;  %v925_v50 = vadd.f32 %v1323_v47, %v924_v49  ;;  %v1430_v51 = vpop.f32.mrb[9].mxu1  ;;  %v1438_v52 = vpop.f32.mrb[25].mxu0 }
 0xe79   : > { %v862_v55 = vpop.f32.mrb[10].mxu1  ;;  %v927_v56 = vpop.f32.mrb[26].mxu0 }
 0xe7a   : > { %930 = vst.msk [vmem:[#allocation3] sm:$0xff] %vm865_vm4, %v925_v50  ;;  %v1431_v57 = vpop.f32.mrb[11].mxu1  ;;  %v1439_v58 = vpop.f32.mrb[27].mxu0 }
 0xe7f   : > { %v933_v60 = vld [vmem:[#allocation2] sm:$0xff] }
 0xe80   : > { %v942_v61 = vrot.slane %v933_v60, %v941_v59  ;;  %v935_v63 = vcombine.high %v933_v60, %v933_v60 }
 0xe81   : > { %v984_v9 = vld [vmem:[#allocation3] sm:$0xff] }
 0xe82   : > { %v950_v1 = vcombine.high %v942_v61, %v942_v61  ;;  %v958_v2 = vrot.slane %v942_v61, %v941_v59  ;;  %v949_v3 = vrot.slane %v935_v63, %v941_v59 }
 0xe84   : > { %v972_v4 = vrot.slane %v950_v1, %v941_v59  ;;  %v980_v6 = vcombine.high %v958_v2, %v958_v2  ;;  %v988_v7 = vrot.slane %v958_v2, %v987_v62  ;;  %v951_v8 = vcombine.high %v949_v3, %v949_v3 }
 0xe85   : > { %v965_v10 = vrot.slane %v949_v3, %v941_v59 }
 0xe86   : > { %v982_v11 = vcombine.high %v972_v4, %v972_v4  ;;  %v992_v12 = vrot.slane %v972_v4, %v987_v62  ;;  %v1025_v13 = vadd.f32 %v988_v7, %v984_v9  ;;  %v996_v14 = vrot.slane %v980_v6, %v987_v62 }
 0xe87   : > { %v979_v15 = vrot.slane %v951_v8, %v941_v59  ;;  %v1004_v16 = vrot.slane %v965_v10, %v987_v62  ;;  %v981_v20 = vcombine.high %v965_v10, %v965_v10 }
 0xe88   : > { %v1026_v17 = vadd.f32 %v992_v12, %v984_v9  ;;  %v1000_v18 = vrot.slane %v982_v11, %v987_v62  ;;  %v1027_v19 = vadd.f32 %v996_v14, %v984_v9  ;;  %v1033_v24 = vmax.f32 %v1025_v13, 0.0 }
 0xe89   : > { %v1008_v21 = vrot.slane %v979_v15, %v987_v62  ;;  %v1029_v22 = vadd.f32 %v1004_v16, %v984_v9  ;;  %v983_v23 = vcombine.high %v979_v15, %v979_v15  ;;  %v1012_v31 = vrot.slane %v981_v20, %v987_v62 }
 0xe8a   : > { %v1034_v5 = vmax.f32 %v1026_v17, 0.0  ;;  %v1028_v25 = vadd.f32 %v1000_v18, %v984_v9  ;;  %v1035_v29 = vmax.f32 %v1027_v19, 0.0 }
 0xe8b   : > { %v1030_v26 = vadd.f32 %v1008_v21, %v984_v9  ;;  %v1016_v27 = vrot.slane %v983_v23, %v987_v62  ;;  %v1037_v32 = vmax.f32 %v1029_v22, 0.0  ;;  %v1031_v37 = vadd.f32 %v1012_v31, %v984_v9 }
 0xe8c   : > { %v1041_v28 = vpack.c.bf16 %v1034_v5, %v1033_v24  ;;  %v1036_v30 = vmax.f32 %v1028_v25, 0.0 }
 0xe8d   : > { %v1038_v33 = vmax.f32 %v1030_v26, 0.0  ;;  %v1032_v35 = vadd.f32 %v1016_v27, %v984_v9  ;;  %v1039_v0 = vmax.f32 %v1031_v37, 0.0 }
 0xe8e   : > { %1452 = vmatprep.mubr.msk.bf16.mxu1 %vm865_vm4, %v1041_v28  ;;  %v1042_v34 = vpack.c.bf16 %v1036_v30, %v1035_v29 }
 0xe8f   : > { %v1043_v36 = vpack.c.bf16 %v1038_v33, %v1037_v32  ;;  %v1040_v38 = vmax.f32 %v1032_v35, 0.0 }
 0xe90   : > { %1453 = vmatmul.mubr.msk.bf16.vlgmr.msra.gmra.mrb[12].mxu1 %vm865_vm4, %v1042_v34 }
 0xe91   : > { %1456 = vmatprep.mubr.msk.bf16.mxu1 %vm865_vm4, %v1043_v36  ;;  %v1044_v39 = vpack.c.bf16 %v1040_v38, %v1039_v0 }
 0xe98   : > { %1457 = vmatmul.mubr.msk.bf16.gmra.mrb[16].mxu1 %vm865_vm4, %v1044_v39 }
 0xf63   : > { %v1454_v41 = vpop.f32.mrb[12].mxu1 }
 0xf64   : > { %v1156_v42 = vadd.f32 %v1454_v41, %v1327_v40  ;;  %v1147_v43 = vpop.f32.mrb[13].mxu1 }
 0xf65   : > { %v1148_v44 = vadd.f32 %v1327_v40, %v1147_v43  ;;  %v1455_v45 = vpop.f32.mrb[14].mxu1 }
 0xf66   : > { %1181 = vst.msk [vmem:[%s311_s8 + $0x10] sm:$0xff] %vm1178_vm5, %v1156_v42  ;;  %v1159_v46 = vadd.f32 %v1455_v45, %v1327_v40  ;;  %v1150_v47 = vpop.f32.mrb[15].mxu1 }
 0xf67   : > { %1179 = vst.msk [vmem:[%s311_s8] sm:$0xff] %vm1178_vm5, %v1148_v44  ;;  %v1151_v48 = vadd.f32 %v1327_v40, %v1150_v47 }
 0xf68   : > { %1182 = vst.msk [vmem:[%s311_s8 + $0x18] sm:$0xff] %vm1178_vm5, %v1159_v46 }
 0xf69   : > { %1180 = vst.msk [vmem:[%s311_s8 + $0x8] sm:$0xff] %vm1178_vm5, %v1151_v48 }
 0xf6b   : > { %v1458_v49 = vpop.f32.mrb[16].mxu1 }
 0xf6c   : > { %v1172_v50 = vadd.f32 %v1458_v49, %v1327_v40  ;;  %v1163_v51 = vpop.f32.mrb[17].mxu1 }
 0xf6d   : > { %v1164_v52 = vadd.f32 %v1327_v40, %v1163_v51  ;;  %v1459_v53 = vpop.f32.mrb[18].mxu1 }
 0xf6e   : > { %1185 = vst.msk [vmem:[%s311_s8 + $0x30] sm:$0xff] %vm1178_vm5, %v1172_v50  ;;  %v1175_v54 = vadd.f32 %v1459_v53, %v1327_v40  ;;  %v1166_v55 = vpop.f32.mrb[19].mxu1 }
 0xf6f   : > { %1183 = vst.msk [vmem:[%s311_s8 + $0x20] sm:$0xff] %vm1178_vm5, %v1164_v52  ;;  %v1167_v56 = vadd.f32 %v1327_v40, %v1166_v55 }
 0xf70   : > { %1186 = vst.msk [vmem:[%s311_s8 + $0x38] sm:$0xff] %vm1178_vm5, %v1175_v54 }
 0xf71   : > { %1184 = vst.msk [vmem:[%s311_s8 + $0x28] sm:$0xff] %vm1178_vm5, %v1167_v56 }
 0xf72   : > { %1602 = shalt.err (!%p1599_p7)
}
 0xf73   : > { %s1603_s18 = scalar_lea.hbm %s1940_s21, 1024  ;;  %s1607_s8 = scalar_lea.hbm %s2002_s7, 2048 }
 0xf74   : > { %p1604_p9 = scmp.ne.s32.totalorder %s1940_s21, %s1603_s18  ;;  %p1608_p2 = scmp.lt.u32.totalorder %s1940_s21, %s2002_s7 }
 0xf75   : > { %p1609_p4 = scmp.lt.u32.totalorder %s1607_s8, %s1603_s18  ;;  %p1611_p10 = scmp.lt.u32.totalorder %s1603_s18, %s1940_s21 }
 0xf76   : > { %p1605_p12 = pnand %p1604_p9, %p2014_p11 }
 0xf77   : > { %p1610_p8 = por %p1609_p4, %p1608_p2 }
 0xf78   : > { %p1606_p0 = pneg %p1605_p12 }
 0xf79   : > { %p1612_p13 = por %p1611_p10, %p1610_p8 }
 0xf7b   : > { %p1613_p1 = pnand %p1612_p13, %p1606_p0 }
 0xf7d   : > { %1616 = shalt.err (!%p1613_p1)
}
 0xf7e   : > { %s1680_s20 = smov 128   ;;  %s1681_s23 = smov 8  }
 0xf7f   : > { %1464 = dma.vmem_to_hbm [thread:$0]  (%p2014_p11), %s1942_s12, 1024, %s1940_s21, %s1949_s27, %s1680_s20, %s1680_s20, %s1681_s23  }
 0xf80 PF: > { %p1476_p3 = scmp.ge.s32.totalorder %s1671_s29, 2  ;;  %s1218_s15 = sand.u32 1, %s1651_s24  }
 0xf81   : > { %p2015_p5 = scmp.ne.s32.totalorder %s2008_s13, 0  ;;  %s1219_s16 = scalar_lea.sflag [#allocation6], %s1218_s15 }
 0xf83   : > { %p1471_p6 = pnand %p1476_p3, %p2015_p5 }
 0xf85   : > { %1646 = dma.done.wait (!%p1471_p6), %s1219_s16, 1024  }
 0xf86   : > { %1648 = vsyncadd (!%p1471_p6), %s1219_s16, 4294966272  ;;  %s21_s29 = sadd.s32 1, %s1671_s29   ;;  %s2016_s24 = smov %s1655_s25 }
 0xf87   : > { %p18_p7 = scmp.ge.s32.totalorder %s21_s29, 4   ;;  %s2017_s25 = smov %s1659_s26 }
 0xf88   : > { %s2018_s26 = smov %s1775_s14  ;;  %s2019_s27 = smov %s1667_s28 }
 0xf89   : > { %s2020_s28 = smov %s2022_s9  ;;  %20 = sbr.rel (!%p18_p7) target bundleno = 5 (0x5), region = 96 }
 0xf90   :  { %1224 = vsyncpa [#allocation5], 1 }
 0xf91   :  { %1226 = vsyncpa [#allocation5 + $0x1], 1 }
 0xf92   :  { %1227 = vsyncpa [#allocation6], 1 }
 0xf93   :  { %1229 = vsyncpa [#allocation6 + $0x1], 1 }

</bundles_post_ra>
